<compile_context>
chip_gen: v6e
topology: v6e:2x2x1
jax: 0.10.0
libtpu: 0.0.40
codegen_flags: <defaults>
</compile_context>

<pallas_src>
import functools
from typing import NamedTuple

import jax
import jax.numpy as jnp
from jax.experimental import pallas as pl
from jax.experimental.pallas import tpu as pltpu


def _round_up(x, m):
    return ((x + m - 1) // m) * m


class PackedCriticParams(NamedTuple):
    """Pre-packed / pre-cast critic parameters (build once, reuse per call)."""
    w1: jax.Array    # [obs_dim, 2*h1] bf16  (q1|q2 layer-1 fused)
    b1: jax.Array    # [1, 2*h1]       f32
    w2a: jax.Array   # [h1, h2]        bf16
    b2a: jax.Array   # [1, h2]         f32
    w2b: jax.Array   # [h1, h2]        bf16
    b2b: jax.Array   # [1, h2]         f32
    w3: jax.Array    # [2*h2, n_pad]   bf16  (block layout, see pack fn)
    b3: jax.Array    # [1, n_pad]      f32
    n_actions: int   # static python int


def pack_critic_params(params_q1, params_q2):
    """Pack/cast both Q-nets' parameters once (hoisted out of the forward)."""
    (w1a, b1a), (w2a, b2a), (w3a, b3a) = params_q1
    (w1b, b1b), (w2b, b2b), (w3b, b3b) = params_q2
    h1, h2 = w2a.shape
    n_actions = w3a.shape[1]
    n_pad = _round_up(2 * n_actions, 128)

    # Fused layer 1 of both nets.
    w1 = jnp.concatenate([w1a, w1b], axis=1).astype(jnp.bfloat16)   # [obs, 2h1]
    b1 = jnp.concatenate([b1a, b1b], axis=1).astype(jnp.float32)    # [1, 2h1]

    # Layer 3 of both heads packed into a single [2*h2, n_pad] matmul so the
    # kernel emits ONE 128-lane output slab:
    #   q1 -> cols [0, n_actions), q2 -> cols [n_actions, 2*n_actions).
    w3 = jnp.zeros((2 * h2, n_pad), jnp.float32)
    w3 = w3.at[:h2, :n_actions].set(w3a)
    w3 = w3.at[h2:, n_actions:2 * n_actions].set(w3b)
    b3 = jnp.zeros((1, n_pad), jnp.float32)
    b3 = b3.at[:, :n_actions].set(b3a)
    b3 = b3.at[:, n_actions:2 * n_actions].set(b3b)

    return PackedCriticParams(
        w1=w1, b1=b1,
        w2a=w2a.astype(jnp.bfloat16), b2a=b2a.astype(jnp.float32),
        w2b=w2b.astype(jnp.bfloat16), b2b=b2b.astype(jnp.float32),
        w3=w3.astype(jnp.bfloat16), b3=b3,
        n_actions=n_actions)


def _critic_kernel(obs_ref, w1_ref, b1_ref,
                   w2a_ref, b2a_ref, w2b_ref, b2b_ref,
                   w3_ref, b3_ref, out_ref, *, n_actions, fuse_min):
    """One batch tile of both Q networks.

    Matmuls run in bf16 on the MXU with f32 accumulation; bias-add / ReLU stay
    f32 on the VPU.  The two heads' layer-3 land in ONE lane-dense [tb, n_pad]
    slab (q1 in cols [0,n), q2 in cols [n,2n)).  If fuse_min, the epilogue
    rotates q2 lanes under q1 lanes (XLU) and stores the elementwise min.
    """
    h1, h2 = w2a_ref.shape
    n_pad = w3_ref.shape[1]

    x = obs_ref[...].astype(jnp.bfloat16)

    # Fused layer 1 for both nets: [tb, obs_dim] @ [obs_dim, 2*h1].
    h = jnp.dot(x, w1_ref[...], preferred_element_type=jnp.float32) + b1_ref[...]
    h = jnp.maximum(h, 0.0)                                   # ReLU (VPU, f32)
    if h1 % 128 == 0:
        # One cast pass over [tb, 2*h1]; both slices stay 128-lane aligned.
        h = h.astype(jnp.bfloat16)
        h_a, h_b = h[:, :h1], h[:, h1:]
    else:
        h_a = h[:, :h1].astype(jnp.bfloat16)
        h_b = h[:, h1:].astype(jnp.bfloat16)

    # Layer 2 per head (block-diagonal fusion would double real MXU work).
    z_a = jnp.dot(h_a, w2a_ref[...], preferred_element_type=jnp.float32) + b2a_ref[...]
    z_b = jnp.dot(h_b, w2b_ref[...], preferred_element_type=jnp.float32) + b2b_ref[...]
    z_a = jnp.maximum(z_a, 0.0).astype(jnp.bfloat16)
    z_b = jnp.maximum(z_b, 0.0).astype(jnp.bfloat16)

    # Layer 3: both heads into one lane-dense [tb, n_pad] slab.
    if h2 % 128 == 0:
        # Lane-aligned concat -> a single MXU matmul with K = 2*h2.
        z = jnp.concatenate([z_a, z_b], axis=1)               # [tb, 2*h2]
        q = jnp.dot(z, w3_ref[...], preferred_element_type=jnp.float32)
    else:
        # Tiny / unaligned hidden dims: two dots summed into the same slab.
        q = (jnp.dot(z_a, w3_ref[:h2, :], preferred_element_type=jnp.float32)
             + jnp.dot(z_b, w3_ref[h2:, :], preferred_element_type=jnp.float32))
    q = q + b3_ref[...]

    if fuse_min:
        # min_Qs fused in-kernel: lane-rotate q2 under q1 (XLU, no extra
        # matmul or HBM round trip) and take the elementwise min.  Only the
        # first n_actions lanes are meaningful; the wrapper slices them.
        q_rot = pltpu.roll(q, shift=n_pad - n_actions, axis=1)
        out_ref[...] = jnp.minimum(q, q_rot).astype(out_ref.dtype)
    else:
        out_ref[...] = q.astype(out_ref.dtype)


def _forward_packed(obs, p, *, batch_tile=512, fuse_min=False,
                    out_dtype=jnp.float32):
    """Runs the kernel and returns the raw [B, n_pad] packed output slab."""
    assert batch_tile % 8 == 0, "batch_tile must be a multiple of 8"
    B, obs_dim = obs.shape
    h1, h2 = p.w2a.shape
    n_pad = p.w3.shape[1]

    # Batch tiling: cap the tile at ~B/2 so the grid has >= 2 steps whenever
    # possible (v7x 2-TC megacore sharding + pipelining); pad the ragged tail.
    tb = min(batch_tile, _round_up(max((B + 1) // 2, 1), 8))
    B_pad = _round_up(B, tb)
    if B_pad != B:
        obs = jnp.pad(obs, ((0, B_pad - B), (0, 0)))
    grid = (B_pad // tb,)

    def wspec(shape):
        # Full-extent block, same block every step -> weights fetched once and
        # stay resident in VMEM across the whole grid.
        return pl.BlockSpec(shape, lambda i: (0, 0))

    in_specs = [
        pl.BlockSpec((tb, obs_dim), lambda i: (i, 0)),        # obs tile
        wspec((obs_dim, 2 * h1)), wspec((1, 2 * h1)),
        wspec((h1, h2)), wspec((1, h2)),
        wspec((h1, h2)), wspec((1, h2)),
        wspec((2 * h2, n_pad)), wspec((1, n_pad)),
    ]
    out_specs = pl.BlockSpec((tb, n_pad), lambda i: (i, 0))
    out_shape = jax.ShapeDtypeStruct((B_pad, n_pad), out_dtype)

    # Cost estimate for XLA scheduling.
    flops = 2 * B_pad * (obs_dim * 2 * h1 + 2 * h1 * h2 + 2 * h2 * n_pad)
    weight_bytes = 2 * (p.w1.size + p.w2a.size + p.w2b.size + p.w3.size)
    bias_bytes = 4 * (p.b1.size + p.b2a.size + p.b2b.size + p.b3.size)
    out_bytes = B_pad * n_pad * jnp.dtype(out_dtype).itemsize
    bytes_accessed = 4 * obs.size + out_bytes + weight_bytes + bias_bytes

    # Only raise the scoped-VMEM limit when the resident-buffer estimate
    # exceeds the 32 MiB default (large hidden dims); cap below v7x's 64 MiB
    # physical VMEM.  v6e/v5e have 128 MiB physical so the cap is conservative.
    vmem_est = (2 * tb * obs_dim * 4 + 2 * tb * n_pad * 4
                + 2 * (weight_bytes + bias_bytes))
    vmem_limit = min(int(vmem_est * 1.25), 60 << 20) if vmem_est > (32 << 20) else None

    kernel = functools.partial(_critic_kernel,
                               n_actions=p.n_actions, fuse_min=fuse_min)
    out = pl.pallas_call(
        kernel,
        grid=grid,
        in_specs=in_specs,
        out_specs=out_specs,
        out_shape=out_shape,
        compiler_params=pltpu.CompilerParams(
            dimension_semantics=("parallel",),
            vmem_limit_bytes=vmem_limit),
        cost_estimate=pl.CostEstimate(
            flops=flops, transcendentals=0, bytes_accessed=bytes_accessed),
    )(obs, p.w1, p.b1, p.w2a, p.b2a, p.w2b, p.b2b, p.w3, p.b3)
    return out[:B]


def discrete_critic_forward_packed(obs, packed, **kw):
    """DiscreteCritic.forward with pre-packed params -> (Q1s, Q2s)."""
    out = _forward_packed(obs, packed, fuse_min=False, **kw)
    n = packed.n_actions
    return out[:, :n], out[:, n:2 * n]


def min_Qs_packed(obs, packed, **kw):
    """DiscreteCritic.min_Qs with pre-packed params (min fused in-kernel)."""
    out = _forward_packed(obs, packed, fuse_min=True, **kw)
    return out[:, :packed.n_actions]


def discrete_critic_forward(obs, params_q1, params_q2, **kw):
    """Convenience wrapper (re-packs per call; prefer the packed API)."""
    return discrete_critic_forward_packed(
        obs, pack_critic_params(params_q1, params_q2), **kw)


def min_Qs(obs, params_q1, params_q2, **kw):
    return min_Qs_packed(obs, pack_critic_params(params_q1, params_q2), **kw)


def init_mlp_params(key, dims):
    """Deterministic init of an MLP with layer sizes `dims` (weights [in,out])."""
    params = []
    for d_in, d_out in zip(dims[:-1], dims[1:]):
        k_w, k_b, key = jax.random.split(key, 3)
        bound = 1.0 / jnp.sqrt(d_in)   # mimic torch.nn.Linear default init
        w = jax.random.uniform(k_w, (d_in, d_out), jnp.float32, -bound, bound)
        b = jax.random.uniform(k_b, (1, d_out), jnp.float32, -bound, bound)
        params.append((w, b))
    return params


def reference_forward(obs, params):
    x = obs
    n = len(params)
    for i, (w, b) in enumerate(params):
        x = x @ w + b
        if i < n - 1:
            x = jnp.maximum(x, 0.0)
    return x


if __name__ == "__main__":
    key = jax.random.PRNGKey(0)

    # ---- Small config (exercises the unaligned two-dot layer-3 path). -------
    B, obs_dim, n_actions = 8, 16, 4
    hidden_dims = (32, 32)
    k_obs, k_q1, k_q2, key = jax.random.split(key, 4)
    obs = jax.random.normal(k_obs, (B, obs_dim), jnp.float32)
    params_q1 = init_mlp_params(k_q1, [obs_dim, *hidden_dims, n_actions])
    params_q2 = init_mlp_params(k_q2, [obs_dim, *hidden_dims, n_actions])

    packed = pack_critic_params(params_q1, params_q2)   # pack / cast ONCE

    q1, q2 = jax.block_until_ready(discrete_critic_forward_packed(obs, packed))
    q1_ref = reference_forward(obs, params_q1)
    q2_ref = reference_forward(obs, params_q2)
    assert q1.shape == (B, n_actions) and q2.shape == (B, n_actions)
    assert jnp.allclose(q1, q1_ref, atol=5e-2, rtol=5e-2)
    assert jnp.allclose(q2, q2_ref, atol=5e-2, rtol=5e-2)

    # Fused min_Qs path.
    qmin = jax.block_until_ready(min_Qs_packed(obs, packed))
    assert qmin.shape == (B, n_actions)
    assert jnp.allclose(qmin, jnp.minimum(q1_ref, q2_ref), atol=5e-2, rtol=5e-2)

    # Ragged batch (not a tile multiple -> zero-pad + slice; grid of 2 steps).
    obs_odd = jax.random.normal(k_obs, (10, obs_dim), jnp.float32)
    q1o, q2o = jax.block_until_ready(
        discrete_critic_forward_packed(obs_odd, packed))
    assert q1o.shape == (10, n_actions) and q2o.shape == (10, n_actions)
    assert jnp.allclose(q1o, reference_forward(obs_odd, params_q1),
                        atol=5e-2, rtol=5e-2)
    assert jnp.allclose(q2o, reference_forward(obs_odd, params_q2),
                        atol=5e-2, rtol=5e-2)

    # ---- Module-default hidden dims (256, 256): lane-aligned single-dot
    # layer-3 path, grid >= 2 for v7x megacore sharding. ----------------------
    B2, n_act2, hidden2 = 64, 6, (256, 256)
    k_obs2, k_q1b, k_q2b, key = jax.random.split(key, 4)
    obs2 = jax.random.normal(k_obs2, (B2, obs_dim), jnp.float32)
    p1b = init_mlp_params(k_q1b, [obs_dim, *hidden2, n_act2])
    p2b = init_mlp_params(k_q2b, [obs_dim, *hidden2, n_act2])
    packed2 = pack_critic_params(p1b, p2b)

    q1b, q2b = jax.block_until_ready(
        discrete_critic_forward_packed(obs2, packed2))
    q1b_ref = reference_forward(obs2, p1b)
    q2b_ref = reference_forward(obs2, p2b)
    assert q1b.shape == (B2, n_act2) and q2b.shape == (B2, n_act2)
    assert jnp.allclose(q1b, q1b_ref, atol=5e-2, rtol=5e-2)
    assert jnp.allclose(q2b, q2b_ref, atol=5e-2, rtol=5e-2)
    qminb = jax.block_until_ready(min_Qs_packed(obs2, packed2))
    assert jnp.allclose(qminb, jnp.minimum(q1b_ref, q2b_ref),
                        atol=5e-2, rtol=5e-2)

    # Unpacked convenience API (packs per call; prefer the packed path).
    _ = jax.block_until_ready(discrete_critic_forward(obs, params_q1, params_q2))

    print("KERNEL_OK")
</pallas_src>

<mosaic_0001>
module attributes {stable_mosaic.version = 11 : i64} {
  func.func @_critic_kernel(%arg0: i32, %arg1: memref<8x16xf32, #tpu.memory_space<vmem>>, %arg2: memref<16x64xbf16, #tpu.memory_space<vmem>>, %arg3: memref<1x64xf32, #tpu.memory_space<vmem>>, %arg4: memref<32x32xbf16, #tpu.memory_space<vmem>>, %arg5: memref<1x32xf32, #tpu.memory_space<vmem>>, %arg6: memref<32x32xbf16, #tpu.memory_space<vmem>>, %arg7: memref<1x32xf32, #tpu.memory_space<vmem>>, %arg8: memref<64x128xbf16, #tpu.memory_space<vmem>>, %arg9: memref<1x128xf32, #tpu.memory_space<vmem>>, %arg10: memref<8x128xf32, #tpu.memory_space<vmem>>) attributes {dimension_semantics = [#tpu.dimension_semantics<parallel>], iteration_bounds = array<i64: 1>, scalar_prefetch = 0 : i64, scratch_operands = 0 : i64, tpu.core_type = #tpu.core_type<tc>, window_params = [{transform_indices = @transform_0, window_bounds = array<i64: 8, 16>}, {pipeline_mode = #tpu.pipeline_mode<synchronous>, transform_indices = @transform_1, window_bounds = array<i64: 16, 64>}, {pipeline_mode = #tpu.pipeline_mode<synchronous>, transform_indices = @transform_2, window_bounds = array<i64: 1, 64>}, {pipeline_mode = #tpu.pipeline_mode<synchronous>, transform_indices = @transform_3, window_bounds = array<i64: 32, 32>}, {pipeline_mode = #tpu.pipeline_mode<synchronous>, transform_indices = @transform_4, window_bounds = array<i64: 1, 32>}, {pipeline_mode = #tpu.pipeline_mode<synchronous>, transform_indices = @transform_5, window_bounds = array<i64: 32, 32>}, {pipeline_mode = #tpu.pipeline_mode<synchronous>, transform_indices = @transform_6, window_bounds = array<i64: 1, 32>}, {pipeline_mode = #tpu.pipeline_mode<synchronous>, transform_indices = @transform_7, window_bounds = array<i64: 64, 128>}, {pipeline_mode = #tpu.pipeline_mode<synchronous>, transform_indices = @transform_8, window_bounds = array<i64: 1, 128>}, {transform_indices = @transform_9, window_bounds = array<i64: 8, 128>}]} {
    %c0 = arith.constant 0 : index
    %c0_0 = arith.constant 0 : index
    %0 = vector.load %arg1[%c0, %c0_0] : memref<8x16xf32, #tpu.memory_space<vmem>>, vector<8x16xf32>
    %1 = arith.truncf %0 : vector<8x16xf32> to vector<8x16xbf16>
    %c0_1 = arith.constant 0 : index
    %c0_2 = arith.constant 0 : index
    %2 = vector.load %arg2[%c0_1, %c0_2] : memref<16x64xbf16, #tpu.memory_space<vmem>>, vector<16x64xbf16>
    %cst = arith.constant dense<0.000000e+00> : vector<8x64xf32>
    %3 = tpu.matmul %1, %2, %cst {dimension_numbers = #tpu.dot_dimension_numbers<[1], [0], [0], [1], [0, 0, 1, 1], [], []>} : vector<8x16xbf16>, vector<16x64xbf16>, vector<8x64xf32> -> vector<8x64xf32>
    %c0_3 = arith.constant 0 : index
    %c0_4 = arith.constant 0 : index
    %4 = vector.load %arg3[%c0_3, %c0_4] : memref<1x64xf32, #tpu.memory_space<vmem>>, vector<1x64xf32>
    %5 = vector.broadcast %4 : vector<1x64xf32> to vector<8x64xf32>
    %6 = arith.addf %3, %5 : vector<8x64xf32>
    %cst_5 = arith.constant 0.000000e+00 : f32
    %7 = vector.broadcast %cst_5 : f32 to vector<8x64xf32>
    %8 = arith.maximumf %6, %7 : vector<8x64xf32>
    %9 = vector.extract_strided_slice %8 {offsets = [0, 0], sizes = [8, 32], strides = [1, 1]} : vector<8x64xf32> to vector<8x32xf32>
    %10 = arith.truncf %9 : vector<8x32xf32> to vector<8x32xbf16>
    %11 = vector.extract_strided_slice %8 {offsets = [0, 32], sizes = [8, 32], strides = [1, 1]} : vector<8x64xf32> to vector<8x32xf32>
    %12 = arith.truncf %11 : vector<8x32xf32> to vector<8x32xbf16>
    %c0_6 = arith.constant 0 : index
    %c0_7 = arith.constant 0 : index
    %13 = vector.load %arg4[%c0_6, %c0_7] : memref<32x32xbf16, #tpu.memory_space<vmem>>, vector<32x32xbf16>
    %cst_8 = arith.constant dense<0.000000e+00> : vector<8x32xf32>
    %14 = tpu.matmul %10, %13, %cst_8 {dimension_numbers = #tpu.dot_dimension_numbers<[1], [0], [0], [1], [0, 0, 1, 1], [], []>} : vector<8x32xbf16>, vector<32x32xbf16>, vector<8x32xf32> -> vector<8x32xf32>
    %c0_9 = arith.constant 0 : index
    %c0_10 = arith.constant 0 : index
    %15 = vector.load %arg5[%c0_9, %c0_10] : memref<1x32xf32, #tpu.memory_space<vmem>>, vector<1x32xf32>
    %16 = vector.broadcast %15 : vector<1x32xf32> to vector<8x32xf32>
    %17 = arith.addf %14, %16 : vector<8x32xf32>
    %c0_11 = arith.constant 0 : index
    %c0_12 = arith.constant 0 : index
    %18 = vector.load %arg6[%c0_11, %c0_12] : memref<32x32xbf16, #tpu.memory_space<vmem>>, vector<32x32xbf16>
    %cst_13 = arith.constant dense<0.000000e+00> : vector<8x32xf32>
    %19 = tpu.matmul %12, %18, %cst_13 {dimension_numbers = #tpu.dot_dimension_numbers<[1], [0], [0], [1], [0, 0, 1, 1], [], []>} : vector<8x32xbf16>, vector<32x32xbf16>, vector<8x32xf32> -> vector<8x32xf32>
    %c0_14 = arith.constant 0 : index
    %c0_15 = arith.constant 0 : index
    %20 = vector.load %arg7[%c0_14, %c0_15] : memref<1x32xf32, #tpu.memory_space<vmem>>, vector<1x32xf32>
    %21 = vector.broadcast %20 : vector<1x32xf32> to vector<8x32xf32>
    %22 = arith.addf %19, %21 : vector<8x32xf32>
    %cst_16 = arith.constant 0.000000e+00 : f32
    %23 = vector.broadcast %cst_16 : f32 to vector<8x32xf32>
    %24 = arith.maximumf %17, %23 : vector<8x32xf32>
    %25 = arith.truncf %24 : vector<8x32xf32> to vector<8x32xbf16>
    %cst_17 = arith.constant 0.000000e+00 : f32
    %26 = vector.broadcast %cst_17 : f32 to vector<8x32xf32>
    %27 = arith.maximumf %22, %26 : vector<8x32xf32>
    %28 = arith.truncf %27 : vector<8x32xf32> to vector<8x32xbf16>
    %c0_18 = arith.constant 0 : index
    %c0_19 = arith.constant 0 : index
    %29 = vector.load %arg8[%c0_18, %c0_19] : memref<64x128xbf16, #tpu.memory_space<vmem>>, vector<32x128xbf16>
    %cst_20 = arith.constant dense<0.000000e+00> : vector<8x128xf32>
    %30 = tpu.matmul %25, %29, %cst_20 {dimension_numbers = #tpu.dot_dimension_numbers<[1], [0], [0], [1], [0, 0, 1, 1], [], []>} : vector<8x32xbf16>, vector<32x128xbf16>, vector<8x128xf32> -> vector<8x128xf32>
    %c32 = arith.constant 32 : index
    %c0_21 = arith.constant 0 : index
    %31 = vector.load %arg8[%c32, %c0_21] : memref<64x128xbf16, #tpu.memory_space<vmem>>, vector<32x128xbf16>
    %cst_22 = arith.constant dense<0.000000e+00> : vector<8x128xf32>
    %32 = tpu.matmul %28, %31, %cst_22 {dimension_numbers = #tpu.dot_dimension_numbers<[1], [0], [0], [1], [0, 0, 1, 1], [], []>} : vector<8x32xbf16>, vector<32x128xbf16>, vector<8x128xf32> -> vector<8x128xf32>
    %33 = arith.addf %30, %32 : vector<8x128xf32>
    %c0_23 = arith.constant 0 : index
    %c0_24 = arith.constant 0 : index
    %34 = vector.load %arg9[%c0_23, %c0_24] : memref<1x128xf32, #tpu.memory_space<vmem>>, vector<1x128xf32>
    %35 = vector.broadcast %34 : vector<1x128xf32> to vector<8x128xf32>
    %36 = arith.addf %33, %35 : vector<8x128xf32>
    %c0_25 = arith.constant 0 : index
    %c0_26 = arith.constant 0 : index
    %37 = vector.load %arg10[%c0_25, %c0_26] : memref<8x128xf32, #tpu.memory_space<vmem>>, vector<8x128xf32>
    tpu.vector_store %arg10[%c0_25, %c0_26], %36 {strides = array<i32>} : memref<8x128xf32, #tpu.memory_space<vmem>>, vector<8x128xf32>,
    return
  }
  func.func @transform_0(%arg0: i32) -> (i32, i32) {
    %c0_i32 = arith.constant 0 : i32
    %c0_i32_0 = arith.constant 0 : i32
    return %arg0, %c0_i32 : i32, i32
  }
  func.func @transform_1(%arg0: i32) -> (i32, i32) {
    %c0_i32 = arith.constant 0 : i32
    %c0_i32_0 = arith.constant 0 : i32
    %c0_i32_1 = arith.constant 0 : i32
    return %c0_i32, %c0_i32_0 : i32, i32
  }
  func.func @transform_2(%arg0: i32) -> (i32, i32) {
    %c0_i32 = arith.constant 0 : i32
    %c0_i32_0 = arith.constant 0 : i32
    %c0_i32_1 = arith.constant 0 : i32
    return %c0_i32, %c0_i32_0 : i32, i32
  }
  func.func @transform_3(%arg0: i32) -> (i32, i32) {
    %c0_i32 = arith.constant 0 : i32
    %c0_i32_0 = arith.constant 0 : i32
    %c0_i32_1 = arith.constant 0 : i32
    return %c0_i32, %c0_i32_0 : i32, i32
  }
  func.func @transform_4(%arg0: i32) -> (i32, i32) {
    %c0_i32 = arith.constant 0 : i32
    %c0_i32_0 = arith.constant 0 : i32
    %c0_i32_1 = arith.constant 0 : i32
    return %c0_i32, %c0_i32_0 : i32, i32
  }
  func.func @transform_5(%arg0: i32) -> (i32, i32) {
    %c0_i32 = arith.constant 0 : i32
    %c0_i32_0 = arith.constant 0 : i32
    %c0_i32_1 = arith.constant 0 : i32
    return %c0_i32, %c0_i32_0 : i32, i32
  }
  func.func @transform_6(%arg0: i32) -> (i32, i32) {
    %c0_i32 = arith.constant 0 : i32
    %c0_i32_0 = arith.constant 0 : i32
    %c0_i32_1 = arith.constant 0 : i32
    return %c0_i32, %c0_i32_0 : i32, i32
  }
  func.func @transform_7(%arg0: i32) -> (i32, i32) {
    %c0_i32 = arith.constant 0 : i32
    %c0_i32_0 = arith.constant 0 : i32
    %c0_i32_1 = arith.constant 0 : i32
    return %c0_i32, %c0_i32_0 : i32, i32
  }
  func.func @transform_8(%arg0: i32) -> (i32, i32) {
    %c0_i32 = arith.constant 0 : i32
    %c0_i32_0 = arith.constant 0 : i32
    %c0_i32_1 = arith.constant 0 : i32
    return %c0_i32, %c0_i32_0 : i32, i32
  }
  func.func @transform_9(%arg0: i32) -> (i32, i32) {
    %c0_i32 = arith.constant 0 : i32
    %c0_i32_0 = arith.constant 0 : i32
    return %arg0, %c0_i32 : i32, i32
  }
}

</mosaic_0001>

<bundles_post_ra>
// kernel: tpu_custom_call.1
= control target key start
LH: loop header
LB: loop body
LE: loop exit
PB: predicated region body
PF: predicated region fallthrough
CT: control target
= control target key end

     0   :  { %14 = vsyncpa [#allocation3], 0  ;;  %s777_s0 = inlined_call_operand.hbm [shape: f32[8,16], index: 0, kind: input, shape index: {}]   ;;  %s778_s1 = inlined_call_operand.hbm [shape: bf16[16,64], index: 1, kind: input, shape index: {}]   ;;  %s779_s2 = inlined_call_operand.vmem [shape: f32[1,64], index: 2, kind: input, shape index: {}]   ;;  %s780_s3 = inlined_call_operand.hbm [shape: bf16[32,32], index: 3, kind: input, shape index: {}]   ;;  %s781_s4 = inlined_call_operand.vmem [shape: f32[1,32], index: 4, kind: input, shape index: {}]   ;;  %s782_s5 = inlined_call_operand.hbm [shape: bf16[32,32], index: 5, kind: input, shape index: {}]   ;;  %s783_s6 = inlined_call_operand.vmem [shape: f32[1,32], index: 6, kind: input, shape index: {}]   ;;  %s784_s7 = inlined_call_operand.hbm [shape: bf16[64,128], index: 7, kind: input, shape index: {}]   ;;  %s785_s8 = inlined_call_operand.vmem [shape: f32[1,128], index: 8, kind: input, shape index: {}]   ;;  %s786_s9 = inlined_call_operand.hbm [shape: f32[8,128], index: 9, kind: output, shape index: {}]  }
   0x1   :  { %15 = vsyncpa [#allocation6], 0 }
   0x2   :  { %16 = vsyncpa [#allocation9], 0 }
   0x3   :  { %17 = vsyncpa [#allocation4], 0  ;;  %s665_s30 = smov [#allocation5]  }
   0x4   :  { %s33_s10 = sshll.u32 %s665_s30, 4  ;;  %s34_s10 = int_to_ptr.vmem [resolvable:$true] %s33_s10 }
   0x5   :  { %s545_s11 = scalar_lea.vmem %s34_s10, 128  ;;  %p550_p1 = scmp.lt.s32.totalorder %s34_s10, %s34_s10 }
   0x6   :  { %p546_p0 = scmp.ne.s32.totalorder %s34_s10, %s545_s11  ;;  %p551_p2 = scmp.lt.s32.totalorder %s545_s11, %s545_s11 }
   0x8   :  { %p552_p3 = por %p551_p2, %p550_p1 }
   0xa   :  { %p553_p4 = pnand %p552_p3, %p546_p0 }
   0xc   :  { %556 = shalt.err (!%p553_p4)
}
   0xd   :  { %s666_s12 = smov 64   ;;  %s667_s13 = smov 4  }
   0xe   :  { %39 = dma.hbm_to_vmem [thread:$0]  %s778_s1, 128, %s34_s10, [#allocation6], %s666_s12, %s666_s12, %s667_s13  }
   0xf   :  { %s668_s16 = smov [#allocation8]   ;;  %s669_s18 = smov [#allocation2]  }
  0x10   :  { %s61_s17 = sshll.u32 %s668_s16, 4  ;;  %s24_s19 = sshll.u32 %s669_s18, 4  ;;  %s62_s17 = int_to_ptr.vmem [resolvable:$true] %s61_s17  ;;  %s25_s19 = int_to_ptr.vmem [resolvable:$true] %s24_s19 }
  0x11   :  { %s565_s20 = scalar_lea.vmem %s62_s17, 256  ;;  %p570_p6 = scmp.lt.s32.totalorder %s62_s17, %s62_s17 }
  0x12   :  { %p566_p5 = scmp.ne.s32.totalorder %s62_s17, %s565_s20  ;;  %p571_p7 = scmp.lt.s32.totalorder %s565_s20, %s565_s20 }
  0x14   :  { %p572_p8 = por %p571_p7, %p570_p6 }
  0x16   :  { %p573_p9 = pnand %p572_p8, %p566_p5 }
  0x18   :  { %576 = shalt.err (!%p573_p9)
}
  0x19   :  { %67 = dma.hbm_to_vmem [thread:$0]  %s782_s5, 256, %s62_s17, [#allocation9], %s666_s12, %s666_s12, %s667_s13  }
  0x1a   :  { %s585_s1 = scalar_lea.vmem %s25_s19, 128  ;;  %p590_p11 = scmp.lt.s32.totalorder %s25_s19, %s25_s19 }
  0x1b   :  { %p586_p10 = scmp.ne.s32.totalorder %s25_s19, %s585_s1  ;;  %p591_p12 = scmp.lt.s32.totalorder %s585_s1, %s585_s1 }
  0x1d   :  { %p592_p13 = por %p591_p12, %p590_p11 }
  0x1f   :  { %p593_p0 = pnand %p592_p13, %p586_p10 }
  0x21   :  { %596 = shalt.err (!%p593_p0)
}
  0x22   :  { %27 = dma.hbm_to_vmem [thread:$0]  %s777_s0, 128, %s25_s19, [#allocation3]  }
  0x23   :  { %s670_s25 = smov [#allocation7]   ;;  %s671_s27 = smov [#allocation10]  }
  0x24   :  { %s47_s26 = sshll.u32 %s670_s25, 4  ;;  %s75_s28 = sshll.u32 %s671_s27, 4  ;;  %s48_s26 = int_to_ptr.vmem [resolvable:$true] %s47_s26  ;;  %s76_s28 = int_to_ptr.vmem [resolvable:$true] %s75_s28 }
  0x25   :  { %s605_s29 = scalar_lea.vmem %s48_s26, 256  ;;  %p610_p2 = scmp.lt.s32.totalorder %s48_s26, %s48_s26 }
  0x26   :  { %p606_p1 = scmp.ne.s32.totalorder %s48_s26, %s605_s29  ;;  %p611_p3 = scmp.lt.s32.totalorder %s605_s29, %s605_s29 }
  0x28   :  { %p612_p4 = por %p611_p3, %p610_p2 }
  0x2a   :  { %p613_p5 = pnand %p612_p4, %p606_p1 }
  0x2c   :  { %616 = shalt.err (!%p613_p5)
}
  0x2d   :  { %53 = dma.hbm_to_vmem [thread:$0]  %s780_s3, 256, %s48_s26, [#allocation6], %s666_s12, %s666_s12, %s667_s13  }
  0x2e   :  { %s625_s0 = scalar_lea.vmem %s76_s28, 512  ;;  %p630_p7 = scmp.lt.s32.totalorder %s76_s28, %s76_s28 }
  0x2f   :  { %p626_p6 = scmp.ne.s32.totalorder %s76_s28, %s625_s0  ;;  %p631_p8 = scmp.lt.s32.totalorder %s625_s0, %s625_s0 }
  0x31   :  { %p632_p9 = por %p631_p8, %p630_p7 }
  0x33   :  { %p633_p10 = pnand %p632_p9, %p626_p6 }
  0x35   :  { %636 = shalt.err (!%p633_p10)
}
  0x36   :  { %81 = dma.hbm_to_vmem [thread:$0]  %s784_s7, 512, %s76_s28, [#allocation9], %s666_s12, %s666_s12, %s667_s13  }
  0x37   :  { %657 = dma.done.wait [#allocation3], 128  }
  0x38   :  { %658 = vsyncadd [#allocation3], 4294967168 }
  0x39   :  { %659 = dma.done.wait [#allocation6], 384  }
  0x3a   :  { %660 = vsyncadd [#allocation6], 4294966912 }
  0x3b   :  { %661 = dma.done.wait [#allocation9], 768  }
  0x3c   :  { %662 = vsyncadd [#allocation9], 4294966528  ;;  %v672_v0 = vmov 0.0   ;;  %vm673_vm0 = vmmov 0   ;;  %v528_v1 = vld [vmem:[#allocation5] sm:$0xff]   ;;  %v100_v2 = vld [vmem:[#allocation2] sm:$0xff] }
  0x3d   :  { %479 = vmatprep.subr.bf16.mxu0 %v672_v0  ;;  %481 = vmatprep.mubr.msk.bf16.mxu0 %vm673_vm0, %v672_v0  ;;  %vm117_vm1 = vcmask 130048   ;;  %v101_v3 = vpack.c.bf16 %v100_v2, %v100_v2  ;;  %v529_v4 = vld [vmem:[#allocation7 + $0x8] sm:$0xff]   ;;  %v530_v5 = vld [vmem:[#allocation7] sm:$0xff]   ;;  %v531_v6 = vld [vmem:[#allocation8 + $0x8] sm:$0xff]   ;;  %vm186_vm2 = vcmask 261120   ;;  %s674_s12 = smov 96  }
  0x3e   :  { %485 = vmatprep.subr.bf16.mxu1 %v672_v0  ;;  %489 = vmatprep.mubr.msk.bf16.mxu1 %vm673_vm0, %v672_v0  ;;  %v532_v7 = vld [vmem:[#allocation8] sm:$0xff]   ;;  %v535_v16 = vld [vmem:[#allocation10 + $0x18] sm:$0xff]   ;;  %v533_v17 = vld [vmem:[#allocation10 + $0x8] sm:$0xff]   ;;  %s675_s17 = smov [#allocation11]  }
  0x3f   :  { %480 = vmatpush3.bf16.msra.mxu0 %v528_v1  ;;  %486 = vmatpush3.bf16.msra.mxu1 %v529_v4  ;;  %v447_v8 = vld [vmem:[%s779_s2] ss:$0 sm:$0xff]  ;;  %v534_v19 = vld [vmem:[#allocation10] sm:$0xff]  }
  0x40   :  { %493 = vmatprep.subr.bf16.mxu0 %v672_v0  ;;  %487 = vmatprep.subr.bf16.mxu1 %v672_v0  ;;  %v536_v20 = vld [vmem:[#allocation10 + $0x10] sm:$0xff]  }
  0x41   :  { %v450_v21 = vld [vmem:[%s781_s4] ss:$0 sm:$0xff] }
  0x42   :  { %482 = vmatmul.mubr.msk.bf16.vlgmr.msra.gmra.mxu0 %vm117_vm1, %v101_v3  ;;  %v454_v29 = vld [vmem:[%s783_s6] ss:$0 sm:$0xff]  ;;  %s436_s6 = sshll.u32 %s675_s17, 4  ;;  %s437_s6 = int_to_ptr.vmem [resolvable:$true] %s436_s6 }
  0x43   :  { %497 = vmatprep.mubr.msk.bf16.mxu0 %vm673_vm0, %v672_v0  ;;  %488 = vmatpush3.bf16.msra.mxu1 %v530_v5  ;;  %v464_v42 = vld [vmem:[%s785_s8] ss:$0 sm:$0xff]  ;;  %s637_s18 = scalar_lea.vmem %s437_s6, 128  ;;  %p642_p12 = scmp.lt.s32.totalorder %s437_s6, %s437_s6 }
  0x44   :  { %501 = vmatprep.subr.bf16.mxu1 %v672_v0  ;;  %494 = vmatpush3.bf16.msra.mxu0 %v531_v6  ;;  %p638_p11 = scmp.ne.s32.totalorder %s437_s6, %s637_s18  ;;  %p643_p13 = scmp.lt.s32.totalorder %s637_s18, %s637_s18 }
  0x45   :  { %495 = vmatprep.subr.bf16.mxu0 %v672_v0 }
  0x46   :  { %p644_p0 = por %p643_p13, %p642_p12 }
  0x48   :  { %496 = vmatpush3.bf16.msra.mxu0 %v532_v7  ;;  %p645_p1 = pnand %p644_p0, %p638_p11 }
  0x49   :  { %509 = vmatprep.subr.bf16.mxu0 %v672_v0 }
 0x102   :  { %v155_v9 = vpop.f32.mrf.mxu0 }
 0x103   :  { %v156_v10 = vadd.f32 %v447_v8, %v155_v9 }
 0x104   :  { %v483_v11 = vpop.f32.mrf.mxu0 }
 0x105   :  { %v161_v12 = vmax.f32 %v156_v10, 0.0 }
 0x106   :  { %v158_v13 = vpop.f32.mrf.mxu0 }
 0x107   :  { %v162_v14 = vpack.c.bf16 %v161_v12, %v161_v12 }
 0x108   :  { %v484_v15 = vpop.f32.mrf.mxu0 }
 0x109   :  { %490 = vmatmul.mubr.msk.bf16.vlgmr.msra.gmra.mxu1 %vm186_vm2, %v162_v14  ;;  %242 = vrot.lane.b32.xlu0 %v162_v14, %s674_s12 }
 0x10a   :  { %505 = vmatprep.mubr.msk.bf16.mxu1 %vm673_vm0, %v672_v0  ;;  %502 = vmatpush3.bf16.msra.mxu1 %v535_v16 }
 0x10b   :  { %503 = vmatprep.subr.bf16.mxu1 %v672_v0 }
 0x10e   :  { %504 = vmatpush3.bf16.msra.mxu1 %v536_v20 }
 0x17b   :  { %v243_v18 = vpop.permute.xlu0 %242 }
 0x17c   :  { %498 = vmatmul.mubr.msk.bf16.vlgmr.msra.gmra.mxu0 %vm186_vm2, %v243_v18 }
 0x17d   :  { %510 = vmatpush3.bf16.msra.mxu0 %v533_v17  ;;  %513 = vmatprep.mubr.msk.bf16.mxu0 %vm673_vm0, %v672_v0 }
 0x17e   :  { %511 = vmatprep.subr.bf16.mxu0 %v672_v0 }
 0x181   :  { %512 = vmatpush3.bf16.msra.mxu0 %v534_v19 }
 0x1c9   :  { %v224_v22 = vpop.f32.mrf.mxu1 }
 0x1ca   :  { %v225_v23 = vadd.f32 %v450_v21, %v224_v22 }
 0x1cb   :  { %v491_v24 = vpop.f32.mrf.mxu1 }
 0x1cc   :  { %v299_v25 = vmax.f32 %v225_v23, 0.0 }
 0x1cd   :  { %v227_v26 = vpop.f32.mrf.mxu1 }
 0x1ce   :  { %v300_v27 = vpack.c.bf16 %v299_v25, %v299_v25 }
 0x1cf   :  { %v492_v28 = vpop.f32.mrf.mxu1 }
 0x1d0   :  { %514 = vmatmul.mubr.msk.bf16.vlgmr.msra.gmra.mxu0 %vm186_vm2, %v300_v27 }
 0x23c   :  { %v293_v30 = vpop.f32.mrf.mxu0 }
 0x23d   :  { %v294_v31 = vadd.f32 %v454_v29, %v293_v30 }
 0x23e   :  { %v499_v32 = vpop.f32.mrf.mxu0 }
 0x23f   :  { %v301_v33 = vmax.f32 %v294_v31, 0.0 }
 0x240   :  { %v296_v34 = vpop.f32.mrf.mxu0 }
 0x241   :  { %v302_v35 = vpack.c.bf16 %v301_v33, %v301_v33 }
 0x242   :  { %v500_v36 = vpop.f32.mrf.mxu0 }
 0x243   :  { %506 = vmatmul.mubr.msk.bf16.vlgmr.msra.gmra.mxu1 %vm186_vm2, %v302_v35 }
 0x290   :  { %v415_v37 = vpop.f32.mrf.mxu0 }
 0x292   :  { %v515_v38 = vpop.f32.mrf.mxu0 }
 0x294   :  { %v418_v39 = vpop.f32.mrf.mxu0 }
 0x296   :  { %v516_v40 = vpop.f32.mrf.mxu0 }
 0x303   :  { %v360_v41 = vpop.f32.mrf.mxu1 }
 0x304   :  { %v416_v43 = vadd.f32 %v415_v37, %v360_v41 }
 0x305   :  { %v507_v44 = vpop.f32.mrf.mxu1 }
 0x306   :  { %v428_v45 = vadd.f32 %v464_v42, %v416_v43 }
 0x307   :  { %v363_v46 = vpop.f32.mrf.mxu1 }
 0x308   :  { %429 = vst [vmem:[#allocation11] sm:$0xff] %v428_v45 }
 0x309   :  { %v508_v47 = vpop.f32.mrf.mxu1 }
 0x30a   :  { %648 = shalt.err (!%p645_p1)
}
 0x30b   :  { %439 = dma.vmem_to_hbm [thread:$0]  %s437_s6, 128, %s786_s9, [#allocation4]  }
 0x30c   :  { %663 = dma.done.wait [#allocation4], 128  }
 0x30d   :  { %664 = vsyncadd [#allocation4], 4294967168 }
 0x30e   :  { %443 = vsyncpa [#allocation3], 1 }
 0x30f   :  { %444 = vsyncpa [#allocation6], 1 }
 0x310   :  { %445 = vsyncpa [#allocation9], 1 }
 0x311   :  { %446 = vsyncpa [#allocation4], 1 }

</bundles_post_ra>
